<compile_context>
chip_gen: v6e
topology: v6e:2x2x1
jax: 0.10.0
libtpu: 0.0.40
codegen_flags: <defaults>
</compile_context>

<pallas_src>
import jax
import jax.numpy as jnp
import numpy as np
from jax.experimental import pallas as pl
from jax.experimental.pallas import tpu as pltpu


# ----------------------------------------------------------------------------
# Kernels
# ----------------------------------------------------------------------------
def _nanmax_pool_masked_kernel(x_ref, mask_ref, o_ref):
    # x_ref:    (TB, TS, TH)  float   VMEM
    # mask_ref: (TB, TS, 1)   int32   VMEM  (S on sublanes, matches x)
    # o_ref:    (TB, TH)      float   VMEM  (resident accumulator across k)
    k = pl.program_id(2)
    min_val = jnp.finfo(o_ref.dtype).min

    @pl.when(k == 0)
    def _init():
        o_ref[...] = jnp.full(o_ref.shape, min_val, o_ref.dtype)

    x = x_ref[...]
    invalid = mask_ref[...] == 0                       # (TB, TS, 1)
    x = jnp.where(invalid | jnp.isnan(x), min_val, x)  # broadcast over lanes (H)
    o_ref[...] = jnp.maximum(o_ref[...], jnp.max(x, axis=1))


def _nanmax_pool_kernel(x_ref, o_ref):
    # No-mask variant: only the NaN -> min select.
    k = pl.program_id(2)
    min_val = jnp.finfo(o_ref.dtype).min

    @pl.when(k == 0)
    def _init():
        o_ref[...] = jnp.full(o_ref.shape, min_val, o_ref.dtype)

    x = x_ref[...]
    x = jnp.where(jnp.isnan(x), min_val, x)
    o_ref[...] = jnp.maximum(o_ref[...], jnp.max(x, axis=1))


# ----------------------------------------------------------------------------
# Tiling helpers + wrapper
# ----------------------------------------------------------------------------
def _pick_tile(dim: int, target: int, align: int) -> int:
    """Largest divisor of `dim` that is a multiple of `align` and <= target,
    falling back to the full dimension (always legal for BlockSpec)."""
    if dim <= target:
        return dim
    best = None
    t = align
    while t <= target:
        if dim % t == 0:
            best = t
        t += align
    return best if best is not None else dim


def nanmax_pool(tensor: jax.Array, attention_mask=None,
                tb=None, th=None, ts=None) -> jax.Array:
    """Masked nanmax pooling over dim=1 (sequence) via a tiled Pallas kernel."""
    assert tensor.ndim == 3, "expected [batch, seq, hidden]"
    assert jnp.issubdtype(tensor.dtype, jnp.floating), "nanmax needs a float dtype"
    B, S, H = tensor.shape
    itemsize = jnp.dtype(tensor.dtype).itemsize

    # Tile selection (generation-safe: x tile capped ~8 MiB so 2x double-buffer
    # fits v7x's 64 MiB VMEM; bigger tiles on bf16 automatically).
    TB = tb if tb is not None else _pick_tile(B, 8, 8)
    TH = th if th is not None else _pick_tile(H, 512, 128)
    ts_target = max(8, (8 * 1024 * 1024) // max(1, TB * TH * itemsize))
    TS = ts if ts is not None else _pick_tile(S, ts_target, 8)

    grid = (B // TB, H // TH, S // TS)

    x_spec = pl.BlockSpec((TB, TS, TH), lambda i, j, k: (i, k, j))
    out_spec = pl.BlockSpec((TB, TH), lambda i, j, k: (i, j))

    x_tile_bytes = TB * TS * TH * itemsize
    mask_tile_bytes = TB * TS * 4
    out_tile_bytes = TB * TH * itemsize
    need = 2 * x_tile_bytes + 2 * mask_tile_bytes + out_tile_bytes
    vmem_limit = int(min(max(2 * need, 32 << 20), 64 << 20))

    cparams = pltpu.CompilerParams(
        dimension_semantics=("parallel", "parallel", "arbitrary"),
        vmem_limit_bytes=vmem_limit,
    )
    out_shape = jax.ShapeDtypeStruct((B, H), tensor.dtype)

    if attention_mask is None:
        return pl.pallas_call(
            _nanmax_pool_kernel,
            out_shape=out_shape,
            grid_spec=pltpu.PrefetchScalarGridSpec(
                num_scalar_prefetch=0,
                grid=grid,
                in_specs=[x_spec],
                out_specs=out_spec,
            ),
            compiler_params=cparams,
        )(tensor)

    # (B, S) -> (B, S, 1): S lands on sublanes, matching x's layout.
    mask3 = (attention_mask != 0).astype(jnp.int32).reshape(B, S, 1)
    mask_spec = pl.BlockSpec((TB, TS, 1), lambda i, j, k: (i, k, 0))

    return pl.pallas_call(
        _nanmax_pool_masked_kernel,
        out_shape=out_shape,
        grid_spec=pltpu.PrefetchScalarGridSpec(
            num_scalar_prefetch=0,
            grid=grid,
            in_specs=[x_spec, mask_spec],
            out_specs=out_spec,
        ),
        compiler_params=cparams,
    )(tensor, mask3)


def torch_pooling_op(op_name: str, dim: int, tensor: jax.Array,
                     attention_mask=None, *, debug_checks: bool = False) -> jax.Array:
    """JAX/Pallas equivalent of TorchPoolingOP.forward."""
    if attention_mask is not None and debug_checks:
        # Host-side left-padding check. Only under a debug flag: forces a
        # device->host sync and is not jit-safe.
        assert bool(np.asarray(attention_mask)[:, -1].all()), \
            "Attention mask contains 0s at the end while assuming left padding."

    if op_name == "all":
        # identity pooling; masking still applies (masked positions become NaN)
        if attention_mask is not None:
            tensor = jnp.where((attention_mask != 0)[:, :, None], tensor, jnp.nan)
        return tensor

    assert op_name == "max"
    assert dim == 1, "kernel implements pooling over the sequence axis (dim=1)"
    return nanmax_pool(tensor, attention_mask)


# ----------------------------------------------------------------------------
# Self-test
# ----------------------------------------------------------------------------
def _ref_nanmax_pool(x_np, mask_np=None):
    xn = np.array(x_np, copy=True)
    if mask_np is not None:
        xn[~np.asarray(mask_np).astype(bool)] = np.nan
    min_val = np.finfo(xn.dtype).min
    return np.nan_to_num(xn, nan=min_val).max(axis=1)


if __name__ == "__main__":
    key = jax.random.PRNGKey(0)
    k1, k2 = jax.random.split(key)

    # --- Test 1: small shapes from the module spec (B=2, S=8, H=32) ---------
    B, S, H = 2, 8, 32
    x = jax.random.normal(k1, (B, S, H), dtype=jnp.float32)
    x = x.at[0, 3, 5].set(jnp.nan)                # exercise nan_to_num path
    mask = np.ones((B, S), dtype=np.int32)        # left-padded mask
    mask[0, :2] = 0
    mask[1, :3] = 0
    mask = jnp.asarray(mask)

    out = jax.block_until_ready(torch_pooling_op("max", 1, x, mask))
    ref = _ref_nanmax_pool(np.asarray(x), np.asarray(mask))
    np.testing.assert_allclose(np.asarray(out), ref, rtol=1e-6, atol=1e-6)

    # --- Test 2: exercise the tiled/accumulating grid path ------------------
    B2, S2, H2 = 8, 128, 256
    x2 = jax.random.normal(k2, (B2, S2, H2), dtype=jnp.float32)
    x2 = x2.at[1, 5, 7].set(jnp.nan)              # NaN in a valid position
    x2 = x2.at[2, 0, 0].set(jnp.nan)              # NaN in a masked position
    mask2 = np.ones((B2, S2), dtype=np.int32)
    for b in range(B2):
        mask2[b, : (b * 7) % 40] = 0              # varying left padding
    mask2 = jnp.asarray(mask2)

    # Force a multi-block grid: (B/8, H/128, S/32) = (1, 2, 4)
    out2 = jax.block_until_ready(nanmax_pool(x2, mask2, tb=8, th=128, ts=32))
    ref2 = _ref_nanmax_pool(np.asarray(x2), np.asarray(mask2))
    np.testing.assert_allclose(np.asarray(out2), ref2, rtol=1e-6, atol=1e-6)

    # --- Test 3: no-mask path (static branch, simpler kernel) ---------------
    out3 = jax.block_until_ready(nanmax_pool(x2, None, tb=8, th=128, ts=32))
    ref3 = _ref_nanmax_pool(np.asarray(x2), None)
    np.testing.assert_allclose(np.asarray(out3), ref3, rtol=1e-6, atol=1e-6)

    # --- 'all' pooling (identity + NaN masking, plain JAX) ------------------
    out_all = jax.block_until_ready(torch_pooling_op("all", 1, x, mask))
    assert out_all.shape == (B, S, H)

    print("KERNEL_OK")
</pallas_src>

<mosaic_0001>
module attributes {stable_mosaic.version = 11 : i64} {
  func.func @_nanmax_pool_masked_kernel(%arg0: i32, %arg1: i32, %arg2: i32, %arg3: memref<2x8x32xf32, #tpu.memory_space<vmem>>, %arg4: memref<2x8x1xi32, #tpu.memory_space<vmem>>, %arg5: memref<2x32xf32, #tpu.memory_space<vmem>>) attributes {dimension_semantics = [#tpu.dimension_semantics<parallel>, #tpu.dimension_semantics<parallel>, #tpu.dimension_semantics<arbitrary>], iteration_bounds = array<i64: 1, 1, 1>, scalar_prefetch = 0 : i64, scratch_operands = 0 : i64, tpu.core_type = #tpu.core_type<tc>, window_params = [{transform_indices = @transform_0, window_bounds = array<i64: 2, 8, 32>}, {transform_indices = @transform_1, window_bounds = array<i64: 2, 8, 1>}, {transform_indices = @transform_2, window_bounds = array<i64: 2, 32>}]} {
    %c0_i32 = arith.constant 0 : i32
    %0 = arith.cmpi eq, %arg2, %c0_i32 : i32
    %1 = arith.extui %0 : i1 to i32
    %c0_i32_0 = arith.constant 0 : i32
    %2 = arith.cmpi ne, %1, %c0_i32_0 : i32
    scf.if %2 {
      %cst_12 = arith.constant -3.40282347E+38 : f32
      %16 = vector.broadcast %cst_12 : f32 to vector<2x32xf32>
      %c0_13 = arith.constant 0 : index
      %c0_14 = arith.constant 0 : index
      %17 = vector.load %arg5[%c0_13, %c0_14] : memref<2x32xf32, #tpu.memory_space<vmem>>, vector<2x32xf32>
      tpu.vector_store %arg5[%c0_13, %c0_14], %16 {strides = array<i32>} : memref<2x32xf32, #tpu.memory_space<vmem>>, vector<2x32xf32>,
    } else {
    }
    %c0 = arith.constant 0 : index
    %c0_1 = arith.constant 0 : index
    %c0_2 = arith.constant 0 : index
    %3 = vector.load %arg3[%c0, %c0_1, %c0_2] : memref<2x8x32xf32, #tpu.memory_space<vmem>>, vector<2x8x32xf32>
    %c0_3 = arith.constant 0 : index
    %c0_4 = arith.constant 0 : index
    %c0_5 = arith.constant 0 : index
    %4 = vector.load %arg4[%c0_3, %c0_4, %c0_5] : memref<2x8x1xi32, #tpu.memory_space<vmem>>, vector<2x8x1xi32>
    %c0_i32_6 = arith.constant 0 : i32
    %5 = vector.broadcast %c0_i32_6 : i32 to vector<2x8x1xi32>
    %6 = arith.cmpi eq, %4, %5 : vector<2x8x1xi32>
    %7 = arith.cmpf one, %3, %3 : vector<2x8x32xf32>
    %8 = vector.broadcast %6 : vector<2x8x1xi1> to vector<2x8x32xi1>
    %9 = arith.ori %8, %7 : vector<2x8x32xi1>
    %cst = arith.constant -3.40282347E+38 : f32
    %10 = vector.broadcast %cst : f32 to vector<2x8x32xf32>
    %11 = arith.select %9, %10, %3 : vector<2x8x32xi1>, vector<2x8x32xf32>
    %c0_7 = arith.constant 0 : index
    %c0_8 = arith.constant 0 : index
    %12 = vector.load %arg5[%c0_7, %c0_8] : memref<2x32xf32, #tpu.memory_space<vmem>>, vector<2x32xf32>
    %cst_9 = arith.constant dense<0xFF800000> : vector<2x32xf32>
    %13 = vector.multi_reduction <maximumf>, %11, %cst_9 [1] : vector<2x8x32xf32> to vector<2x32xf32>
    %14 = arith.maximumf %12, %13 : vector<2x32xf32>
    %c0_10 = arith.constant 0 : index
    %c0_11 = arith.constant 0 : index
    %15 = vector.load %arg5[%c0_10, %c0_11] : memref<2x32xf32, #tpu.memory_space<vmem>>, vector<2x32xf32>
    tpu.vector_store %arg5[%c0_10, %c0_11], %14 {strides = array<i32>} : memref<2x32xf32, #tpu.memory_space<vmem>>, vector<2x32xf32>,
    return
  }
  func.func @transform_0(%arg0: i32, %arg1: i32, %arg2: i32) -> (i32, i32, i32) {
    %c0_i32 = arith.constant 0 : i32
    return %arg0, %arg2, %arg1 : i32, i32, i32
  }
  func.func @transform_1(%arg0: i32, %arg1: i32, %arg2: i32) -> (i32, i32, i32) {
    %c0_i32 = arith.constant 0 : i32
    %c0_i32_0 = arith.constant 0 : i32
    return %arg0, %arg2, %c0_i32 : i32, i32, i32
  }
  func.func @transform_2(%arg0: i32, %arg1: i32, %arg2: i32) -> (i32, i32) {
    %c0_i32 = arith.constant 0 : i32
    return %arg0, %arg1 : i32, i32
  }
}

</mosaic_0001>

<bundles_post_ra>
// kernel: tpu_custom_call.1
= control target key start
LH: loop header
LB: loop body
LE: loop exit
PB: predicated region body
PF: predicated region fallthrough
CT: control target
= control target key end

     0   :  { %v104_v2 = vmov 0   ;;  %s139_s0 = inlined_call_operand.vmem [shape: f32[2,8,32], index: 0, kind: input, shape index: {}]   ;;  %s140_s1 = inlined_call_operand.vmem [shape: s32[2,8,1], index: 1, kind: input, shape index: {}]   ;;  %s141_s2 = inlined_call_operand.hbm [shape: f32[2,32], index: 2, kind: output, shape index: {}]  }
   0x1   :  { %v20_v0 = vld [vmem:[%s140_s1] sm:$0xff]  ;;  %v21_v1 = vld [vmem:[%s140_s1 + $0x8] sm:$0xff]  ;;  %81 = vset.pattern.permute.xlu0 %v104_v2 }
   0x2   :  { %vm22_vm0 = vcmp.eq.s32.totalorder %v20_v0, 0  ;;  %vm23_vm1 = vcmp.eq.s32.totalorder %v21_v1, 0 }
   0x3   :  { %7 = vsyncpa [#allocation3], 0  ;;  %v26_v3 = vsel %vm22_vm0, 1, %v104_v2  ;;  %v27_v4 = vsel %vm23_vm1, 1, %v104_v2  ;;  %vm16_vm2 = vcmask 254976   ;;  %v18_v6 = vld [vmem:[%s139_s0] sm:$0xff] }
   0x4   :  { %29 = vperm.xlu0 %81, %v26_v3   ;;  %v105_v5 = vmov -3.4028235e+38   ;;  %vm24_vm3 = vcmp.ne.f32.partialorder %v18_v6, %v18_v6  ;;  %v19_v8 = vld [vmem:[%s139_s0 + $0x8] sm:$0xff]  ;;  %vm41_vm4 = vcmask 261120   ;;  %vm58_vm10 = vcmask 1041409   ;;  %s106_s0 = smov [#allocation2]  }
   0x5   :  { %17 = vst.msk [vmem:[#allocation2] sm:$0x3] %vm16_vm2, %v105_v5  ;;  %vm25_vm7 = vcmp.ne.f32.partialorder %v19_v8, %v19_v8  ;;  %s70_s16 = sshll.u32 %s106_s0, 4  ;;  %s71_s16 = int_to_ptr.vmem [resolvable:$true] %s70_s16 }
   0x6   :  { %s82_s17 = scalar_lea.vmem %s71_s16, 32  ;;  %p87_p1 = scmp.lt.s32.totalorder %s71_s16, %s71_s16 }
   0x7   :  { %p83_p0 = scmp.ne.s32.totalorder %s71_s16, %s82_s17  ;;  %p88_p2 = scmp.lt.s32.totalorder %s82_s17, %s82_s17 }
   0x8   :  { %32 = vperm.xlu0 %81, %v27_v4  }
   0x9   :  { %p89_p3 = por %p88_p2, %p87_p1 }
   0xb   :  { %p90_p4 = pnand %p89_p3, %p83_p0 }
   0xc   :  { %v40_v26 = vld [vmem:[#allocation2] sm:$0x3] }
  0x7f   :  { %v30_v7 = vpop.permute.xlu0 %29 }
  0x80   :  { %vm34_vm5 = vcmp.eq.s32.totalorder %v30_v7, 1 }
  0x81   :  { %vm36_vm6 = vmor %vm34_vm5, %vm24_vm3 }
  0x82   :  { %v38_v9 = vsel %vm36_vm6, -3.4028235e+38, %v18_v6 }
  0x83   :  { %v42_v10 = vsel %vm41_vm4, %v38_v9, -inf  ;;  %v33_v11 = vpop.permute.xlu0 %32 }
  0x84   :  { %v43_v12 = vrot.slane %v42_v10, 4  ;;  %vm35_vm8 = vcmp.eq.s32.totalorder %v33_v11, 1 }
  0x85   :  { %vm37_vm9 = vmor %vm35_vm8, %vm25_vm7 }
  0x86   :  { %v44_v13 = vmax.f32 %v42_v10, %v43_v12  ;;  %v39_v14 = vsel %vm37_vm9, -3.4028235e+38, %v19_v8 }
  0x87   :  { %v49_v15 = vsel %vm41_vm4, %v39_v14, -inf }
  0x88   :  { %v45_v16 = vrot.slane %v44_v13, 2  ;;  %v50_v17 = vrot.slane %v49_v15, 4 }
  0x8a   :  { %v46_v18 = vmax.f32 %v44_v13, %v45_v16  ;;  %v51_v19 = vmax.f32 %v49_v15, %v50_v17 }
  0x8c   :  { %v52_v20 = vrot.slane %v51_v19, 2  ;;  %v47_v21 = vrot.slane %v46_v18, 1 }
  0x8e   :  { %v53_v22 = vmax.f32 %v51_v19, %v52_v20  ;;  %v48_v24 = vmax.f32 %v46_v18, %v47_v21 }
  0x90   :  { %v54_v23 = vrot.slane %v53_v22, 1 }
  0x92   :  { %v55_v25 = vmax.f32 %v53_v22, %v54_v23 }
  0x94   :  { %v59_v27 = vsel %vm58_vm10, %v55_v25, %v48_v24 }
  0x95   :  { %v61_v28 = vmax.f32 %v40_v26, %v59_v27 }
  0x97   :  { %63 = vst.msk [vmem:[#allocation2] sm:$0x3] %vm16_vm2, %v61_v28 }
  0x98   :  { %93 = shalt.err (!%p90_p4)
}
  0x99   :  { %73 = dma.vmem_to_hbm [thread:$0]  %s71_s16, 32, %s141_s2, [#allocation3]  }
  0x9a   :  { %102 = dma.done.wait [#allocation3], 32  }
  0x9b   :  { %103 = vsyncadd [#allocation3], 4294967264 }
  0x9c   :  { %77 = vsyncpa [#allocation3], 1 }

</bundles_post_ra>
